<compile_context>
chip_gen: v7x
topology: tpu7x:2x2x1
jax: 0.10.0
libtpu: 0.0.40
codegen_flags: <defaults>
</compile_context>

<pallas_src>
import functools
import math

import jax
import jax.numpy as jnp
from jax import lax
from jax.experimental import pallas as pl
from jax.experimental.pallas import tpu as pltpu


# ----------------------------------------------------------------------------
# Pass 1: partial statistics (per-chunk row sums + gram), accumulated in VMEM
# ----------------------------------------------------------------------------
def _stats_kernel(x_ref, sum_ref, gram_ref):
    """Grid = (chunk, group_block, R0, R1); the last two axes are reductions.

    The output blocks (indexed only by chunk/group_block) stay resident in
    VMEM across the reduction and serve as the accumulators.
    """
    r0 = pl.program_id(2)
    r1 = pl.program_id(3)

    @pl.when((r0 == 0) & (r1 == 0))
    def _init():
        sum_ref[...] = jnp.zeros_like(sum_ref)
        gram_ref[...] = jnp.zeros_like(gram_ref)

    x = x_ref[0]                                   # (cb, hw_tile), input dtype
    # Per-channel sums on the MXU (frees the VPU cast + XLU lane reduce).
    ones_col = jnp.full((x.shape[-1], 1), 1, dtype=x.dtype)
    sum_ref[0, 0] += jnp.dot(x, ones_col, preferred_element_type=jnp.float32)
    # Gram without materializing x.T: contract the lane axis of x with itself.
    gram_ref[0, 0] += lax.dot_general(
        x, x, (((1,), (1,)), ((), ())), preferred_element_type=jnp.float32)


def _iternorm_stats(x_flat, *, cb, hw_tile, n_chunks, split_hw, vmem_limit):
    N, C, HWp = x_flat.shape
    n_gb = C // cb
    n_t = HWp // hw_tile

    if split_hw:
        t_per = n_t // n_chunks
        grid = (n_chunks, n_gb, N, t_per)
        x_map = lambda c, gi, n, t: (n, gi, c * t_per + t)
    else:
        n_per = N // n_chunks
        grid = (n_chunks, n_gb, n_per, n_t)
        x_map = lambda c, gi, n, t: (c * n_per + n, gi, t)

    grid_spec = pltpu.PrefetchScalarGridSpec(
        num_scalar_prefetch=0,
        grid=grid,
        in_specs=[pl.BlockSpec((1, cb, hw_tile), x_map)],
        out_specs=[
            pl.BlockSpec((1, 1, cb, 1), lambda c, gi, n, t: (c, gi, 0, 0)),
            pl.BlockSpec((1, 1, cb, cb), lambda c, gi, n, t: (c, gi, 0, 0)),
        ],
    )
    out_shapes = (
        jax.ShapeDtypeStruct((n_chunks, n_gb, cb, 1), jnp.float32),
        jax.ShapeDtypeStruct((n_chunks, n_gb, cb, cb), jnp.float32),
    )
    return pl.pallas_call(
        _stats_kernel,
        out_shape=out_shapes,
        grid_spec=grid_spec,
        compiler_params=pltpu.CompilerParams(
            dimension_semantics=("parallel", "parallel", "arbitrary",
                                 "arbitrary"),
            vmem_limit_bytes=vmem_limit),
    )(x_flat)


# ----------------------------------------------------------------------------
# Combine partials + trace-normalize + Newton-Schulz (tiny; plain JAX)
# ----------------------------------------------------------------------------
def _whitening_from_partials(sum_p, gram_p, blk, *, T, eps, m):
    total_sum = jnp.sum(sum_p, axis=0)             # (n_gb, cb, 1)
    total_gram = jnp.sum(gram_p, axis=0)           # (n_gb, cb, cb)
    cb = total_gram.shape[-1]
    inv_m = 1.0 / m
    mean = total_sum * inv_m

    eye = jnp.eye(cb, dtype=jnp.float32)
    # Sigma = eps*I + blockdiag(E[x x^T] - mu mu^T)  (centered covariance)
    # TODO(synk): if |mean| >> std for huge m, switch to a centered second
    # pass or partial-sum accumulation to avoid catastrophic cancellation.
    sigma = eps * eye + blk * (total_gram * inv_m
                               - mean * jnp.swapaxes(mean, -1, -2))

    diag = jnp.sum(sigma * eye, axis=-1, keepdims=True)   # (n_gb, cb, 1)
    trace_per_row = jnp.matmul(blk, diag)                  # group trace per row
    r_tr = 1.0 / trace_per_row
    sigma_n = sigma * r_tr                                  # block-diagonal

    # Newton-Schulz: P_{k+1} = 1.5 P_k - 0.5 P_k^3 Sigma_N
    P = jnp.broadcast_to(eye, sigma.shape)
    for _ in range(T):
        P3 = jnp.matmul(jnp.matmul(P, P), P)
        P = 1.5 * P - 0.5 * jnp.matmul(P3, sigma_n)

    wm = P * jnp.sqrt(r_tr)                                 # block-diag whitener
    return mean, wm


# ----------------------------------------------------------------------------
# Pass 2: whitening (+ fused mean subtraction and affine transform)
# ----------------------------------------------------------------------------
def _whiten_kernel(x_ref, wm_ref, b_ref, o_ref):
    # wm is pre-cast to x's dtype in the wrapper; bias is f32.
    y = jnp.dot(wm_ref[0], x_ref[0],
                preferred_element_type=jnp.float32) + b_ref[0]
    o_ref[0] = y.astype(o_ref.dtype)


def _iternorm_whiten(x_flat, wm_f, b_f, *, cb, hw_tile, vmem_limit):
    N, C, HWp = x_flat.shape
    n_gb = C // cb
    n_t = HWp // hw_tile
    grid_spec = pltpu.PrefetchScalarGridSpec(
        num_scalar_prefetch=0,
        grid=(N, n_gb, n_t),              # largest parallel extent first
        in_specs=[
            pl.BlockSpec((1, cb, hw_tile), lambda n, gi, t: (n, gi, t)),
            pl.BlockSpec((1, cb, cb), lambda n, gi, t: (gi, 0, 0)),
            pl.BlockSpec((1, cb, 1), lambda n, gi, t: (gi, 0, 0)),
        ],
        out_specs=pl.BlockSpec((1, cb, hw_tile), lambda n, gi, t: (n, gi, t)),
    )
    # TODO(synk): alias x_flat -> output (input_output_aliases / donation)
    # to save the extra N*C*HW HBM allocation when X is dead after this pass.
    return pl.pallas_call(
        _whiten_kernel,
        out_shape=jax.ShapeDtypeStruct((N, C, HWp), x_flat.dtype),
        grid_spec=grid_spec,
        compiler_params=pltpu.CompilerParams(
            dimension_semantics=("parallel", "parallel", "parallel"),
            vmem_limit_bytes=vmem_limit),
    )(x_flat, wm_f, b_f)


# ----------------------------------------------------------------------------
# Layout / tiling helpers (host-side)
# ----------------------------------------------------------------------------
def _default_merge_limit():
    """cb cap: 128 on v5e (4x128x128 MXU, lower ridge), 256 on v6e/v7x."""
    try:
        kind = jax.devices()[0].device_kind.lower()
    except Exception:
        return 256
    if "v5 lite" in kind or "v5e" in kind or "v5lite" in kind:
        return 128
    return 256


def _pick_hw_tile(hw_pad, cb, itemsize, target_bytes=2 * 1024 * 1024):
    """Largest multiple-of-128 divisor of hw_pad with block bytes <= target."""
    target_lanes = max(128, (target_bytes // max(1, cb * itemsize)) // 128 * 128)
    best = 128
    t = 128
    limit = min(hw_pad, target_lanes)
    while t <= limit:
        if hw_pad % t == 0:
            best = t
        t += 128
    return best


def _pick_chunks(N, n_t):
    """Split the stats reduction into 2 independent chunks when possible so
    megacore (v7x) can shard it across both TensorCores even if n_gb == 1."""
    if n_t % 2 == 0 and n_t >= 2:
        return 2, True      # split the hw-tile axis
    if N % 2 == 0 and N >= 2:
        return 2, False     # split the batch axis
    return 1, False


def _blockdiag_from_groups(wm_g, n_gb, gpb, nc):
    """(g, nc, nc) per-group mats -> (n_gb, gpb*nc, gpb*nc) block-diagonal."""
    cb = gpb * nc
    wm4 = wm_g.reshape(n_gb, gpb, nc, nc)
    out = jnp.zeros((n_gb, gpb, nc, gpb, nc), wm_g.dtype)
    for j in range(gpb):
        out = out.at[:, j, :, j, :].set(wm4[:, j])
    return out.reshape(n_gb, cb, cb)


def _groups_from_blockdiag(wm_bd, n_gb, gpb, nc):
    """(n_gb, gpb*nc, gpb*nc) block-diagonal -> (g, nc, nc) per-group mats."""
    wm5 = wm_bd.reshape(n_gb, gpb, nc, gpb, nc)
    blocks = [wm5[:, j, :, j, :] for j in range(gpb)]
    return jnp.stack(blocks, axis=1).reshape(n_gb * gpb, nc, nc)


# ----------------------------------------------------------------------------
# Functional forward (jit-friendly; returns updated running stats)
# ----------------------------------------------------------------------------
def iternorm_forward(X, running_mean, running_wm, *, num_groups, num_channels,
                     T, eps, momentum, training, weight=None, bias=None,
                     merge_limit=None):
    if merge_limit is None:
        merge_limit = _default_merge_limit()

    N, C = X.shape[0], X.shape[1]
    hw = math.prod(X.shape[2:]) if X.ndim > 2 else 1
    g, nc = num_groups, num_channels
    itemsize = jnp.dtype(X.dtype).itemsize
    # Packed-sublane legality: bf16 needs cb % 16 == 0, int8/fp8 % 32 == 0.
    sub_mult = {1: 32, 2: 16}.get(itemsize, 8)

    # Merge as many groups as fit one MXU tile into a block-diagonal problem.
    gpb = None
    for cand in range(g, 0, -1):
        if g % cand:
            continue
        cbc = cand * nc
        if cbc <= merge_limit and (cbc % sub_mult == 0 or cbc == C):
            gpb = cand
            break
    if gpb is None:
        gpb = g                  # cb == C is always layout-legal
    cb = gpb * nc
    n_gb = g // gpb

    # H*W tiling: pad to a multiple of 128 only when needed; byte-target tile.
    if hw <= 256 and hw % 128 != 0:
        hw_pad, hw_tile = hw, hw            # single full-extent block (legal)
    else:
        hw_pad = ((hw + 127) // 128) * 128
        hw_tile = _pick_hw_tile(hw_pad, cb, itemsize)
    n_t = hw_pad // hw_tile
    m = N * hw                               # true element count (no padding)

    # Free row-major reshape; no transpose round trip through HBM.
    x_flat = X.reshape(N, C, hw)
    if hw_pad != hw:
        x_flat = jnp.pad(x_flat, ((0, 0), (0, 0), (0, hw_pad - hw)))

    blk_bytes = cb * hw_tile * itemsize
    vmem_limit = int(max(32 * 1024 * 1024, 8 * blk_bytes + 8 * cb * cb * 4))

    # Block-diagonal same-group mask (used only by the wrapper-side NS math).
    ch_group = jnp.arange(cb, dtype=jnp.int32) // nc
    blk = (ch_group[:, None] == ch_group[None, :]).astype(jnp.float32)

    if training:
        n_chunks, split_hw = _pick_chunks(N, n_t)
        sum_p, gram_p = _iternorm_stats(x_flat, cb=cb, hw_tile=hw_tile,
                                        n_chunks=n_chunks, split_hw=split_hw,
                                        vmem_limit=vmem_limit)
        mean_b, wm_b = _whitening_from_partials(sum_p, gram_p, blk,
                                                T=T, eps=eps, m=m)
        mean_g = mean_b.reshape(g, nc, 1)
        wm_g = _groups_from_blockdiag(wm_b, n_gb, gpb, nc)
        new_running_mean = momentum * mean_g + (1.0 - momentum) * running_mean
        new_running_wm = momentum * wm_g + (1.0 - momentum) * running_wm
        mean_use, wm_use = mean_b, wm_b
    else:
        new_running_mean = running_mean
        new_running_wm = running_wm
        mean_use = running_mean.astype(jnp.float32).reshape(n_gb, cb, 1)
        wm_use = _blockdiag_from_groups(running_wm.astype(jnp.float32),
                                        n_gb, gpb, nc)

    # Fuse affine + centering into the whitening matmul:
    #   w * (wm @ (x - mean)) + b == (diag(w) wm) @ x + (b - diag(w) wm mean)
    if weight is not None:
        w_col = weight.reshape(n_gb, cb, 1).astype(jnp.float32)
        b_col = bias.reshape(n_gb, cb, 1).astype(jnp.float32)
        wm_f = w_col * wm_use
    else:
        b_col = jnp.zeros((n_gb, cb, 1), jnp.float32)
        wm_f = wm_use
    b_f = b_col - jnp.matmul(wm_f, mean_use)
    wm_cast = wm_f.astype(x_flat.dtype)      # hoist the dtype cast out of kernel

    xn_flat = _iternorm_whiten(x_flat, wm_cast, b_f, cb=cb, hw_tile=hw_tile,
                               vmem_limit=vmem_limit)
    if hw_pad != hw:
        xn_flat = xn_flat[:, :, :hw]
    return xn_flat.reshape(X.shape), new_running_mean, new_running_wm


# ----------------------------------------------------------------------------
# Module-style wrapper (forward only)
# ----------------------------------------------------------------------------
class IterNormJAX:
    """JAX/Pallas equivalent of the PyTorch IterNorm module (forward only)."""
    # TODO(synk): backward pass (custom VJP mirroring the PyTorch autograd
    # Function) is not implemented; forward only.

    def __init__(self, num_features, num_groups=1, num_channels=None, T=5,
                 dim=4, eps=1e-5, momentum=0.1, affine=True):
        self.T = T
        self.eps = eps
        self.momentum = momentum
        self.num_features = num_features
        self.affine = affine
        self.dim = dim
        if num_channels is None:
            num_channels = (num_features - 1) // num_groups + 1
        num_groups = num_features // num_channels
        while num_features % num_channels != 0:
            num_channels //= 2
            num_groups = num_features // num_channels
        assert num_groups > 0 and num_features % num_groups == 0
        self.num_groups = num_groups
        self.num_channels = num_channels

        shape = [1] * dim
        shape[1] = num_features
        if affine:
            self.weight = jnp.ones(shape, jnp.float32)
            self.bias = jnp.zeros(shape, jnp.float32)
        else:
            self.weight = None
            self.bias = None
        self.running_mean = jnp.zeros((num_groups, num_channels, 1),
                                      jnp.float32)
        self.running_wm = jnp.broadcast_to(
            jnp.eye(num_channels, dtype=jnp.float32),
            (num_groups, num_channels, num_channels))
        self.training = True

    def __call__(self, X):
        Xn, new_mean, new_wm = iternorm_forward(
            X, self.running_mean, self.running_wm,
            num_groups=self.num_groups, num_channels=self.num_channels,
            T=self.T, eps=self.eps, momentum=self.momentum,
            training=self.training, weight=self.weight, bias=self.bias)
        if self.training:
            self.running_mean = new_mean
            self.running_wm = new_wm
        return Xn


# ----------------------------------------------------------------------------
# Pure-JAX reference (mirrors the PyTorch autograd.Function forward, dim=4)
# ----------------------------------------------------------------------------
def _reference_forward(X, T, eps, num_groups, num_channels):
    N, C = X.shape[0], X.shape[1]
    spatial = X.shape[2:]
    g, nc = num_groups, num_channels
    x = jnp.transpose(X, (1, 0, 2, 3)).reshape(g, nc, -1)
    d, m = x.shape[1], x.shape[2]
    mean = x.mean(-1, keepdims=True)
    xc = x - mean
    eye = jnp.broadcast_to(jnp.eye(d), (g, d, d))
    sigma = eps * eye + (1.0 / m) * jnp.einsum('gdm,gem->gde', xc, xc)
    rTr = 1.0 / jnp.sum(sigma * eye, axis=(1, 2), keepdims=True)
    sigma_n = sigma * rTr
    P = eye
    for _ in range(T):
        P3 = jnp.einsum('gab,gbc,gcd->gad', P, P, P)
        P = 1.5 * P - 0.5 * jnp.einsum('gab,gbc->gac', P3, sigma_n)
    wm = P * jnp.sqrt(rTr)
    xn = jnp.einsum('gab,gbm->gam', wm, xc)
    Xn = xn.reshape((C, N) + spatial)
    return jnp.transpose(Xn, (1, 0, 2, 3))


if __name__ == "__main__":
    key = jax.random.PRNGKey(0)
    N, C, H, W = 2, 16, 8, 8
    X = jax.random.normal(key, (N, C, H, W), dtype=jnp.float32)

    mod = IterNormJAX(num_features=C, num_groups=2, T=5, dim=4,
                      eps=1e-5, momentum=0.1, affine=True)

    # --- training-mode forward (stats kernel + whiten kernel) ---
    out = jax.block_until_ready(mod(X))
    ref = _reference_forward(X, T=5, eps=1e-5,
                             num_groups=mod.num_groups,
                             num_channels=mod.num_channels)
    ref = ref * mod.weight + mod.bias

    assert out.shape == X.shape
    assert bool(jnp.all(jnp.isfinite(out)))
    err = float(jnp.max(jnp.abs(out - ref)))
    assert err < 1e-3, f"train-mode mismatch vs reference: {err}"

    # running-stat EMA check (buffers start at zero / identity)
    x_g = jnp.transpose(X, (1, 0, 2, 3)).reshape(mod.num_groups,
                                                 mod.num_channels, -1)
    mean_ref = x_g.mean(-1, keepdims=True)
    ema_err = float(jnp.max(jnp.abs(mod.running_mean
                                    - mod.momentum * mean_ref)))
    assert ema_err < 1e-3, f"running_mean EMA mismatch: {ema_err}"

    # --- eval-mode forward (whiten kernel with running stats) ---
    mod.training = False
    out_eval = jax.block_until_ready(mod(X))
    xn_eval = jnp.einsum('gij,gjm->gim', mod.running_wm,
                         x_g - mod.running_mean)
    ref_eval = jnp.transpose(xn_eval.reshape(C, N, H, W), (1, 0, 2, 3))
    ref_eval = ref_eval * mod.weight + mod.bias
    err_e = float(jnp.max(jnp.abs(out_eval - ref_eval)))
    assert err_e < 1e-3, f"eval-mode mismatch vs reference: {err_e}"

    print("KERNEL_OK")
</pallas_src>

<mosaic_0001>
module attributes {stable_mosaic.version = 11 : i64} {
  func.func @_stats_kernel(%arg0: i32, %arg1: i32, %arg2: i32, %arg3: i32, %arg4: memref<1x16x64xf32, #tpu.memory_space<vmem>>, %arg5: memref<1x1x16x1xf32, #tpu.memory_space<vmem>>, %arg6: memref<1x1x16x16xf32, #tpu.memory_space<vmem>>) attributes {dimension_semantics = [#tpu.dimension_semantics<parallel>, #tpu.dimension_semantics<parallel>, #tpu.dimension_semantics<arbitrary>, #tpu.dimension_semantics<arbitrary>], iteration_bounds = array<i64: 2, 1, 1, 1>, scalar_prefetch = 0 : i64, scratch_operands = 0 : i64, tpu.core_type = #tpu.core_type<tc>, window_params = [{transform_indices = @transform_0, window_bounds = array<i64: 1, 16, 64>}, {transform_indices = @transform_1, window_bounds = array<i64: 1, 1, 16, 1>}, {transform_indices = @transform_2, window_bounds = array<i64: 1, 1, 16, 16>}]} {
    %c0_i32 = arith.constant 0 : i32
    %0 = arith.cmpi eq, %arg2, %c0_i32 : i32
    %c0_i32_0 = arith.constant 0 : i32
    %1 = arith.cmpi eq, %arg3, %c0_i32_0 : i32
    %2 = arith.andi %0, %1 : i1
    %3 = arith.extui %2 : i1 to i32
    %c0_i32_1 = arith.constant 0 : i32
    %4 = arith.cmpi ne, %3, %c0_i32_1 : i32
    scf.if %4 {
      %cst_22 = arith.constant 0.000000e+00 : f32
      %22 = vector.broadcast %cst_22 : f32 to vector<1x1x16x1xf32>
      %c0_23 = arith.constant 0 : index
      %c0_24 = arith.constant 0 : index
      %c0_25 = arith.constant 0 : index
      %c0_26 = arith.constant 0 : index
      %23 = vector.load %arg5[%c0_23, %c0_24, %c0_25, %c0_26] : memref<1x1x16x1xf32, #tpu.memory_space<vmem>>, vector<1x1x16x1xf32>
      tpu.vector_store %arg5[%c0_23, %c0_24, %c0_25, %c0_26], %22 {strides = array<i32>} : memref<1x1x16x1xf32, #tpu.memory_space<vmem>>, vector<1x1x16x1xf32>,
      %cst_27 = arith.constant 0.000000e+00 : f32
      %24 = vector.broadcast %cst_27 : f32 to vector<1x1x16x16xf32>
      %c0_28 = arith.constant 0 : index
      %c0_29 = arith.constant 0 : index
      %c0_30 = arith.constant 0 : index
      %c0_31 = arith.constant 0 : index
      %25 = vector.load %arg6[%c0_28, %c0_29, %c0_30, %c0_31] : memref<1x1x16x16xf32, #tpu.memory_space<vmem>>, vector<1x1x16x16xf32>
      tpu.vector_store %arg6[%c0_28, %c0_29, %c0_30, %c0_31], %24 {strides = array<i32>} : memref<1x1x16x16xf32, #tpu.memory_space<vmem>>, vector<1x1x16x16xf32>,
    } else {
    }
    %c0 = arith.constant 0 : index
    %c0_2 = arith.constant 0 : index
    %c0_3 = arith.constant 0 : index
    %5 = vector.load %arg4[%c0, %c0_2, %c0_3] : memref<1x16x64xf32, #tpu.memory_space<vmem>>, vector<1x16x64xf32>
    %6 = vector.shape_cast %5 : vector<1x16x64xf32> to vector<16x64xf32>
    %cst = arith.constant 1.000000e+00 : f32
    %7 = vector.broadcast %cst : f32 to vector<64x1xf32>
    %c0_4 = arith.constant 0 : index
    %c0_5 = arith.constant 0 : index
    %c0_6 = arith.constant 0 : index
    %c0_7 = arith.constant 0 : index
    %8 = vector.load %arg5[%c0_4, %c0_5, %c0_6, %c0_7] : memref<1x1x16x1xf32, #tpu.memory_space<vmem>>, vector<1x1x16x1xf32>
    %9 = vector.shape_cast %8 : vector<1x1x16x1xf32> to vector<16x1xf32>
    %cst_8 = arith.constant dense<0.000000e+00> : vector<16x1xf32>
    %10 = tpu.matmul %6, %7, %cst_8 {dimension_numbers = #tpu.dot_dimension_numbers<[1], [0], [0], [1], [0, 0, 1, 1], [], []>} : vector<16x64xf32>, vector<64x1xf32>, vector<16x1xf32> -> vector<16x1xf32>
    %11 = arith.addf %9, %10 : vector<16x1xf32>
    %c0_9 = arith.constant 0 : index
    %c0_10 = arith.constant 0 : index
    %c0_11 = arith.constant 0 : index
    %c0_12 = arith.constant 0 : index
    %12 = vector.load %arg5[%c0_9, %c0_10, %c0_11, %c0_12] : memref<1x1x16x1xf32, #tpu.memory_space<vmem>>, vector<1x1x16x1xf32>
    %13 = vector.shape_cast %12 : vector<1x1x16x1xf32> to vector<16x1xf32>
    %14 = vector.shape_cast %11 : vector<16x1xf32> to vector<1x1x16x1xf32>
    tpu.vector_store %arg5[%c0_9, %c0_10, %c0_11, %c0_12], %14 {strides = array<i32>} : memref<1x1x16x1xf32, #tpu.memory_space<vmem>>, vector<1x1x16x1xf32>,
    %c0_13 = arith.constant 0 : index
    %c0_14 = arith.constant 0 : index
    %c0_15 = arith.constant 0 : index
    %c0_16 = arith.constant 0 : index
    %15 = vector.load %arg6[%c0_13, %c0_14, %c0_15, %c0_16] : memref<1x1x16x16xf32, #tpu.memory_space<vmem>>, vector<1x1x16x16xf32>
    %16 = vector.shape_cast %15 : vector<1x1x16x16xf32> to vector<16x16xf32>
    %cst_17 = arith.constant dense<0.000000e+00> : vector<16x16xf32>
    %17 = tpu.matmul %6, %6, %cst_17 {dimension_numbers = #tpu.dot_dimension_numbers<[1], [1], [0], [0], [0, 0, 1, 0], [], []>} : vector<16x64xf32>, vector<16x64xf32>, vector<16x16xf32> -> vector<16x16xf32>
    %18 = arith.addf %16, %17 : vector<16x16xf32>
    %c0_18 = arith.constant 0 : index
    %c0_19 = arith.constant 0 : index
    %c0_20 = arith.constant 0 : index
    %c0_21 = arith.constant 0 : index
    %19 = vector.load %arg6[%c0_18, %c0_19, %c0_20, %c0_21] : memref<1x1x16x16xf32, #tpu.memory_space<vmem>>, vector<1x1x16x16xf32>
    %20 = vector.shape_cast %19 : vector<1x1x16x16xf32> to vector<16x16xf32>
    %21 = vector.shape_cast %18 : vector<16x16xf32> to vector<1x1x16x16xf32>
    tpu.vector_store %arg6[%c0_18, %c0_19, %c0_20, %c0_21], %21 {strides = array<i32>} : memref<1x1x16x16xf32, #tpu.memory_space<vmem>>, vector<1x1x16x16xf32>,
    return
  }
  func.func @transform_0(%arg0: i32, %arg1: i32, %arg2: i32, %arg3: i32) -> (i32, i32, i32) {
    %c1_i32 = arith.constant 1 : i32
    %0 = arith.muli %arg0, %c1_i32 : i32
    %1 = arith.addi %0, %arg2 : i32
    %c0_i32 = arith.constant 0 : i32
    return %1, %arg1, %arg3 : i32, i32, i32
  }
  func.func @transform_1(%arg0: i32, %arg1: i32, %arg2: i32, %arg3: i32) -> (i32, i32, i32, i32) {
    %c0_i32 = arith.constant 0 : i32
    %c0_i32_0 = arith.constant 0 : i32
    %c0_i32_1 = arith.constant 0 : i32
    return %arg0, %arg1, %c0_i32, %c0_i32_0 : i32, i32, i32, i32
  }
  func.func @transform_2(%arg0: i32, %arg1: i32, %arg2: i32, %arg3: i32) -> (i32, i32, i32, i32) {
    %c0_i32 = arith.constant 0 : i32
    %c0_i32_0 = arith.constant 0 : i32
    %c0_i32_1 = arith.constant 0 : i32
    return %arg0, %arg1, %c0_i32, %c0_i32_0 : i32, i32, i32, i32
  }
}

</mosaic_0001>

<bundles_post_ra>
// kernel: tpu_custom_call.1
= control target key start
LH: loop header
LB: loop body
LE: loop exit
PB: predicated region body
PF: predicated region fallthrough
CT: control target
= control target key end

     0   :  { %8 = vsyncpa [#allocation3], 0  ;;  %s1065_s0 = inlined_call_operand.hbm [shape: f32[2,16,64], index: 0, kind: input, shape index: {}]   ;;  %s1066_s1 = inlined_call_operand.vmem [shape: f32[2,1,16,1], index: 1, kind: output, shape index: {0}]   ;;  %s1067_s2 = inlined_call_operand.hbm [shape: f32[2,1,16,16], index: 2, kind: output, shape index: {1}]  }
   0x1   :  { %10 = vsyncpa [#allocation3 + $0x1], 0 }
   0x2   :  { %11 = vsyncpa [#allocation4], 0 }
   0x3   :  { %13 = vsyncpa [#allocation4 + $0x1], 0  ;;  %s859_s9 = smov 0   ;;  %s861_s10 = smov 0  }
   0x4   :  { %s863_s11 = smov 0   ;;  %s865_s12 = smov 0  }
   0x5   :  { %s867_s13 = smov 0   ;;  %s869_s14 = smov 0  }
   0x6 LB: > { %s574_s15 = sadd.s32 4294967295, %s834_s14   ;;  %s575_s16 = sadd.s32 4294967294, %s834_s14   ;;  %s834_s14 = sphi %s869_s14, %s19_s14   ;;  %s830_s13 = sphi %s867_s13, %s1082_s13   ;;  %s826_s12 = sphi %s865_s12, %s1081_s12   ;;  %s822_s11 = sphi %s863_s11, %s1080_s11   ;;  %s818_s10 = sphi %s861_s10, %s1079_s10   ;;  %s814_s9 = sphi %s859_s9, %s1078_s9  }
   0x7   : > { %s45_s17 = sadd.s32 1, %s830_s13  ;;  %s58_s18 = sadd.s32 1, %s822_s11 }
   0x8   : > { %p47_p0 = scmp.ge.s32.totalorder %s45_s17, 2  ;;  %p65_p1 = scmp.ne.s32.totalorder %s822_s11, %s818_s10 }
   0x9   : > { %p66_p2 = scmp.eq.s32.totalorder %s834_s14, 0  ;;  %p71_p3 = scmp.ne.s32.totalorder %s818_s10, %s814_s9 }
   0xa   : > { %s1084_s17 = smov (%p47_p0, %s45_s17), 0  ;;  %p72_p5 = scmp.eq.s32.totalorder %s574_s15, 0 }
   0xb   : > { %p900_p4 = por %p66_p2, %p65_p1  ;;  %s51_s20 = ssub.s32 %s830_s13, %s1084_s17 }
   0xc   : > { %p125_p6 = scmp.eq.s32.totalorder %s574_s15, 1  ;;  %p56_p7 = scmp.eq.s32.totalorder %s51_s20, 0 }
   0xd   : > { %p906_p8 = por %p72_p5, %p71_p3  ;;  %p131_p10 = scmp.eq.s32.totalorder %s575_s16, 1 }
   0xe   : > { %p910_p9 = por %p125_p6, %p65_p1  ;;  %p666_p13 = scmp.lt.s32.totalorder %s834_s14, 2 }
   0xf   : > { %s915_s23 = scalar_select %p56_p7, %s822_s11, %s58_s18  }
  0x10   : > { %s1071_s22 = scalar_select %p910_p9, 1, 0 }
  0x11   : > { %p917_p11 = por %p131_p10, %p71_p3  ;;  %s151_s25 = sand.u32 1, %s822_s11  }
  0x12   : > { %s578_s26 = sshll.u32 %s151_s25, 4  ;;  %s597_s27 = sshll.u32 %s830_s13, 8 }
  0x13   : > { %s1072_s24 = scalar_select %p917_p11, 1, 0 }
  0x14   : > { %s928_s30 = scalar_lea.hbm %s1065_s0, %s597_s27  ;;  %s155_s3 = scalar_lea.vmem [#allocation2], %s578_s26 }
  0x15   : > { %s166_s4 = sshll.u32 %s155_s3, 4  ;;  %p934_p0 = pnand %p666_p13, %p900_p4  ;;  %s930_s4 = int_to_ptr.vmem [resolvable:$true] %s166_s4 }
  0x16   : > { %s939_s6 = scalar_lea.sflag [#allocation3], %s151_s25  ;;  %s722_s7 = scalar_lea.hbm %s928_s30, 256 }
  0x17   : > { %p723_p2 = scmp.ne.s32.totalorder %s928_s30, %s722_s7  ;;  %p724_p3 = pneg %p934_p0 }
  0x18   : > { %s727_s16 = scalar_lea.hbm %s1065_s0, 512  ;;  %p728_p4 = scmp.lt.u32.totalorder %s928_s30, %s1065_s0 }
  0x19   : > { %p725_p5 = pnand %p724_p3, %p723_p2  ;;  %p729_p7 = scmp.lt.u32.totalorder %s727_s16, %s722_s7 }
  0x1a   : > { %p731_p13 = scmp.lt.u32.totalorder %s722_s7, %s928_s30 }
  0x1b   : > { %p726_p6 = pneg %p725_p5  ;;  %p730_p10 = por %p729_p7, %p728_p4 }
  0x1d   : > { %p732_p12 = por %p731_p13, %p730_p10 }
  0x1f   : > { %p733_p1 = pnand %p732_p12, %p726_p6 }
  0x21   : > { %736 = shalt.err (!%p733_p1)
}
  0x22   : > { %s737_s20 = scalar_lea.vmem %s930_s4, 256  ;;  %s836_s25 = smov [#allocation2]  }
  0x23   : > { %p738_p2 = scmp.ne.s32.totalorder %s930_s4, %s737_s20  ;;  %s742_s26 = sshll.u32 %s836_s25, 4  ;;  %s743_s26 = int_to_ptr.vmem [resolvable:$false] %s742_s26 }
  0x24   : > { %s744_s27 = scalar_lea.vmem %s743_s26, 512  ;;  %p745_p9 = scmp.lt.s32.totalorder %s930_s4, %s743_s26 }
  0x25   : > { %p740_p5 = pnand %p738_p2, %p724_p3  ;;  %p746_p4 = scmp.lt.s32.totalorder %s744_s27, %s737_s20 }
  0x27   : > { %p741_p11 = pneg %p740_p5  ;;  %p747_p7 = por %p746_p4, %p745_p9 }
  0x29   : > { %p748_p10 = pnand %p747_p7, %p741_p11 }
  0x2b   : > { %751 = shalt.err (!%p748_p10)
}
  0x2c   : > { %s837_s28 = smov 128   ;;  %s838_s29 = smov 8  }
  0x2d   : > { %661 = dma.hbm_to_vmem [thread:$0]  (!%p934_p0), %s928_s30, 256, %s930_s4, %s939_s6, %s837_s28, %s837_s28, %s838_s29  }
  0x2e   : > { %p174_p12 = scmp.lt.s32.totalorder %s834_s14, 3  ;;  %p1074_p1 = scmp.ge.s32.totalorder %s834_s14, 1 }
  0x30   : > { %p175_p3 = pnand %p1074_p1, %p174_p12 }
  0x31   : > { %s971_s3 = sand.u32 (!%p175_p3), 1, %s818_s10  }
  0x32   : > { %178 = sbr.rel (%p175_p3) target bundleno = 305 (0x131), region = 24  ;;  %s582_s7 = sshll.u32 (!%p175_p3), %s971_s3, 4 }
  0x33   : > { %s181_s8 = scalar_lea.sflag (!%p175_p3), [#allocation3], %s971_s3  ;;  %s184_s15 = scalar_lea.vmem (!%p175_p3), [#allocation2], %s582_s7 }
  0x39   : > { %805 = dma.done.wait (%p906_p8), %s181_s8, 256  }
  0x3a   : > { %807 = vsyncadd (%p906_p8), %s181_s8, 4294967040  ;;  %p216_p9 = scmp.lt.s32.totalorder %s826_s12, 1  ;;  %v839_v0 = vmov 1.0|1.0   ;;  %vm231_vm0 = vcmask 7168   ;;  %vm241_vm1 = vcmask 523264  }
  0x3b   : > { %640 = vmatprep.subr.bf16.mxu0 %v839_v0  ;;  %v840_v1 = vmov 0.0   ;;  %v237_v2 = vld [vmem:[%s184_s15] sm:$0xff]  ;;  %v238_v3 = vld [vmem:[%s184_s15 + $0x8] sm:$0xff]  ;;  %vm649_vm2 = vmpackc.low %vm241_vm1, %vm241_vm1  ;;  %vm234_vm3 = vcmask 130048   ;;  %s213_s21 = scalar_lea.vmem [#allocation5], %s582_s7  ;;  %s599_s18 = sshll.u32 %s826_s12, 8 }
  0x3c   : > { %641 = vmatpush3.bf16.msra.mxu0 %v839_v0  ;;  %s217_s30 = scalar_select %p216_p9, %s826_s12, 1  ;;  %v648_v4 = vpack.c.bf16 %v238_v3, %v237_v2  ;;  %630 = vmatprep.mubr.msk.f32.mxu0 %vm241_vm1, %v237_v2  ;;  %236 = vst.msk [vmem:[%s213_s21 + $0x8] sm:$0xff] %vm234_vm3, %v840_v1  ;;  %235 = vst.msk [vmem:[%s213_s21] sm:$0xff] %vm234_vm3, %v840_v1 }
  0x3d   : > { %642 = vmatprep.subr.bf16.mxu0 %v839_v0  ;;  %637 = vmatprep.mubr.msk.f32.mxu1 %vm241_vm1, %v237_v2  ;;  %s438_s19 = sshll.u32 %s213_s21, 4  ;;  %s1008_s26 = scalar_lea.hbm %s1067_s2, %s599_s18  ;;  %s1010_s19 = int_to_ptr.vmem [resolvable:$true] %s438_s19 }
  0x3e   : > { %s598_s4 = sshll.u32 %s217_s30, 4  ;;  %650 = vmatprep.subr.msk.bf16.mxu1 %vm649_vm2, %v648_v4  ;;  %s420_s12 = scalar_lea.sflag [#allocation4], %s971_s3 }
  0x3f   : > { %s986_s16 = scalar_lea.vmem %s1066_s1, %s598_s4  ;;  %653 = vmatpush3.bf16.xpose.msk.msra.mxu1 %vm649_vm2, %v648_v4  ;;  %s752_s27 = scalar_lea.vmem %s1010_s19, 256 }
  0x40   : > { %643 = vmatpush3.bf16.msra.mxu0 %v839_v0  ;;  %233 = vst.msk [vmem:[%s986_s16 + $0x8] sm:$0xff] %vm231_vm0, %v840_v1  ;;  %232 = vst.msk [vmem:[%s986_s16] sm:$0xff] %vm231_vm0, %v840_v1  ;;  %p753_p8 = scmp.ne.s32.totalorder %s1010_s19, %s752_s27  ;;  %p1075_p11 = scmp.ne.s32.totalorder %s1071_s22, 0 }
  0x41   : > { %644 = vmatprep.subr.bf16.mxu0 %v839_v0  ;;  %s841_s28 = smov [#allocation5]  }
  0x42   : > { %p754_p0 = pnand %p753_p8, %p1075_p11  ;;  %s756_s29 = sshll.u32 %s841_s28, 4  ;;  %s757_s29 = int_to_ptr.vmem [resolvable:$false] %s756_s29 }
  0x43   : > { %v329_v6 = vld [vmem:[%s213_s21 + $0x8] sm:$0xff]  ;;  %v328_v9 = vld [vmem:[%s213_s21] sm:$0xff]  ;;  %s758_s7 = scalar_lea.vmem %s757_s29, 512  ;;  %p759_p13 = scmp.lt.s32.totalorder %s1010_s19, %s757_s29 }
  0x44   : > { %645 = vmatpush3.bf16.msra.mxu0 %v839_v0  ;;  %p755_p6 = pneg %p754_p0  ;;  %p760_p2 = scmp.lt.s32.totalorder %s758_s7, %s752_s27 }
  0x45   : > { %646 = vmatprep.subr.bf16.mxu0 %v839_v0 }
  0x46   : > { %638 = vmatmul.mubr.msk.f32.vlgmr.msra.gmra.mrb[0].mxu1 %vm241_vm1, %v238_v3  ;;  %p761_p5 = por %p760_p2, %p759_p13 }
  0x47   : > { %v240_v5 = vld [vmem:[%s986_s16 + $0x8] sm:$0xff]  ;;  %v239_v7 = vld [vmem:[%s986_s16] sm:$0xff] }
  0x48   : > { %647 = vmatpush3.bf16.msra.mxu0 %v839_v0  ;;  %p762_p4 = pnand %p761_p5, %p755_p6 }
  0x4b   : > { %631 = vmatmul.mubr.msk.f32.vlgmr.msra.gmra.mrb[0].mxu0 %vm241_vm1, %v238_v3 }
 0x119   : > { %v639_v11 = vpop.f32.mrb[0].mxu1 }
 0x11a   : > { %v406_v13 = vadd.f32 %v639_v11, %v329_v6  ;;  %v396_v15 = vpop.f32.mrb[1].mxu1 }
 0x11b   : > { %v405_v16 = vadd.f32 %v396_v15, %v328_v9 }
 0x11c   : > { %409 = vst.msk [vmem:[%s213_s21 + $0x8] sm:$0xff] %vm234_vm3, %v406_v13 }
 0x11d   : > { %408 = vst.msk [vmem:[%s213_s21] sm:$0xff] %vm234_vm3, %v405_v16 }
 0x11e   : > { %v632_v8 = vpop.f32.mrb[0].mxu0 }
 0x11f   : > { %v324_v10 = vadd.f32 %v632_v8, %v240_v5  ;;  %v314_v12 = vpop.f32.mrb[1].mxu0 }
 0x120   : > { %v323_v14 = vadd.f32 %v314_v12, %v239_v7 }
 0x121   : > { %327 = vst.msk [vmem:[%s986_s16 + $0x8] sm:$0xff] %vm231_vm0, %v324_v10 }
 0x122   : > { %326 = vst.msk [vmem:[%s986_s16] sm:$0xff] %vm231_vm0, %v323_v14 }
 0x123   : > { %765 = shalt.err (!%p762_p4)
}
 0x124   : > { %s766_s8 = scalar_lea.hbm %s1008_s26, 256  ;;  %s770_s4 = scalar_lea.hbm %s1067_s2, 512 }
 0x125   : > { %p767_p7 = scmp.ne.s32.totalorder %s1008_s26, %s766_s8  ;;  %p771_p1 = scmp.lt.u32.totalorder %s1008_s26, %s1067_s2 }
 0x126   : > { %p772_p3 = scmp.lt.u32.totalorder %s770_s4, %s766_s8  ;;  %p774_p8 = scmp.lt.u32.totalorder %s766_s8, %s1008_s26 }
 0x127   : > { %p768_p10 = pnand %p767_p7, %p1075_p11 }
 0x128   : > { %p773_p9 = por %p772_p3, %p771_p1 }
 0x129   : > { %p769_p12 = pneg %p768_p10 }
 0x12a   : > { %p775_p0 = por %p774_p8, %p773_p9 }
 0x12c   : > { %p776_p6 = pnand %p775_p0, %p769_p12 }
 0x12e   : > { %779 = shalt.err (!%p776_p6)
}
 0x12f   : > { %s842_s16 = smov 128   ;;  %s843_s21 = smov 8  }
 0x130   : > { %656 = dma.vmem_to_hbm [thread:$0]  (%p1075_p11), %s1010_s19, 256, %s1008_s26, %s420_s12, %s842_s16, %s842_s16, %s843_s21  }
 0x131 PF: > { %s465_s18 = sand.u32 1, %s814_s9   ;;  %p1076_p13 = scmp.ne.s32.totalorder %s1072_s24, 0 }
 0x132   : > { %p1077_p2 = scmp.ge.s32.totalorder %s834_s14, 2  ;;  %s466_s20 = scalar_lea.sflag [#allocation4], %s465_s18 }
 0x134   : > { %p663_p5 = pnand %p1077_p2, %p1076_p13 }
 0x136   : > { %809 = dma.done.wait (!%p663_p5), %s466_s20, 256  }
 0x137   : > { %811 = vsyncadd (!%p663_p5), %s466_s20, 4294967040  ;;  %s19_s14 = sadd.s32 1, %s834_s14   ;;  %s1078_s9 = smov %s818_s10 }
 0x138   : > { %p16_p4 = scmp.ge.s32.totalorder %s19_s14, 4   ;;  %s1079_s10 = smov %s822_s11 }
 0x139   : > { %s1080_s11 = smov %s915_s23  ;;  %s1081_s12 = smov %s830_s13 }
 0x13a   : > { %s1082_s13 = smov %s1084_s17  ;;  %18 = sbr.rel (!%p16_p4) target bundleno = 6 (0x6), region = 85 }
 0x141   :  { %471 = vsyncpa [#allocation3], 1 }
 0x142   :  { %473 = vsyncpa [#allocation3 + $0x1], 1 }
 0x143   :  { %474 = vsyncpa [#allocation4], 1 }
 0x144   :  { %476 = vsyncpa [#allocation4 + $0x1], 1 }

</bundles_post_ra>
